<compile_context>
chip_gen: v7x
topology: tpu7x:2x2x1
jax: 0.10.0
libtpu: 0.0.40
codegen_flags: <defaults>
</compile_context>

<pallas_src>
import numpy as np
import jax
import jax.numpy as jnp
from jax.experimental import pallas as pl
from jax.experimental.pallas import tpu as pltpu


_TARGET_TILE_BYTES = 4 * 1024 * 1024   # ~4 MiB per pipeline buffer
_VMEM_LIMIT_BYTES = 32 * 1024 * 1024   # 2 arrays x double-buffered x 4 MiB << 32 MiB
_COL_CANDIDATES = (1024, 896, 768, 640, 512, 384, 256, 128)


def _cdiv(a: int, b: int) -> int:
    return -(-a // b)


def _round_up(x: int, m: int) -> int:
    return ((x + m - 1) // m) * m


def _drop_path_kernel(x_ref, scale_ref, o_ref):
    """o = x * scale  (per-sample broadcast).

    x_ref / o_ref : VMEM tiles (TB, TR, C) in the input dtype.
    scale_ref     : VMEM tile  (TB, 1, 1) float32, values in {0, 1/keep_prob}.
    """
    o_ref[...] = x_ref[...] * scale_ref[...].astype(o_ref.dtype)


def drop_path_pallas(x, *, drop_prob: float = 0.0, training: bool = False,
                     scale_by_keep: bool = True, key=None, seed: int = 0):
    """Pallas implementation of timm-style drop_path (stochastic depth)."""
    if drop_prob == 0.0 or not training:
        return x
    if x.size == 0:
        return x

    keep_prob = 1.0 - float(drop_prob)
    b = int(x.shape[0])
    n = int(np.prod(x.shape[1:])) if x.ndim > 1 else 1

    # Per-sample Bernoulli(keep_prob) draw + optional 1/keep_prob scaling.
    # NOTE: pass a distinct key/seed per layer & step so masks are independent.
    if key is None:
        key = jax.random.PRNGKey(seed)
    keep = jax.random.bernoulli(key, p=keep_prob, shape=(b,))
    scale = keep.astype(jnp.float32)
    if scale_by_keep and keep_prob > 0.0:
        scale = scale / jnp.float32(keep_prob)
    scale3 = scale.reshape(b, 1, 1)

    itemsize = jnp.dtype(x.dtype).itemsize
    sublane = max(8, 32 // itemsize)          # 8 f32 / 16 bf16 / 32 int8

    # ---------------- layout selection (avoid padding if at all possible) ----
    cols = next((c for c in _COL_CANDIDATES if n % c == 0), None)
    padded_n = n
    aliased = False
    if cols is not None:
        # Lane-dense layout with an exact divisor: free reshape, no pad.
        rows = n // cols
        x3 = x.reshape(b, rows, cols)
    elif n * itemsize <= _TARGET_TILE_BYTES:
        # Ragged feature count but small sample: keep the whole sample in the
        # lane dim (block == full array dim is allowed) instead of padding.
        rows, cols = 1, n
        x3 = x.reshape(b, 1, n)
    else:
        # TODO(synk): handle the ragged tail with a masked final row tile
        # instead of materialising a padded copy (costs one extra HBM pass).
        cols = 128
        rows = _cdiv(n, cols)
        padded_n = rows * cols
        x3 = jnp.pad(x.reshape(b, n), ((0, 0), (0, padded_n - n)))
        x3 = x3.reshape(b, rows, cols)
        aliased = True                        # padded temp is safe to donate

    # ---------------- tile sizing (~4 MiB per pipeline buffer) ---------------
    sample_bytes = rows * cols * itemsize
    row_bytes = cols * itemsize
    if sample_bytes <= _TARGET_TILE_BYTES:
        tr = rows                             # full rows (== array dim)
        tb = max(1, min(b, _TARGET_TILE_BYTES // sample_bytes))
    else:
        tb = 1
        tr = max(sublane, (_TARGET_TILE_BYTES // row_bytes) // sublane * sublane)
        tr = min(tr, rows)

    grid_b = _cdiv(b, tb)
    grid_r = _cdiv(rows, tr)
    # v7x megacore: ensure >= 2 parallel blocks whenever possible so both
    # TensorCores get work.  (Near-zero effect on v5e/v6e, harmless.)
    if grid_b * grid_r < 2:
        if b >= 2:
            tb = _cdiv(b, 2)
            grid_b = _cdiv(b, tb)
        elif rows >= 2 * sublane:
            tr = _round_up(_cdiv(rows, 2), sublane)
            grid_r = _cdiv(rows, tr)

    extra_kwargs = {}
    if aliased:
        extra_kwargs["input_output_aliases"] = {0: 0}

    # TODO(synk): optional further win — skip HBM reads of dropped samples via
    # a scalar-prefetch gather over kept-sample indices (needs a static grid,
    # so it would over-allocate to b and mask; omitted for simplicity).
    out = pl.pallas_call(
        _drop_path_kernel,
        out_shape=jax.ShapeDtypeStruct((b, rows, cols), x.dtype),
        grid=(grid_b, grid_r),
        in_specs=[
            pl.BlockSpec((tb, tr, cols), lambda i, r: (i, r, 0)),
            pl.BlockSpec((tb, 1, 1), lambda i, r: (i, 0, 0)),
        ],
        out_specs=pl.BlockSpec((tb, tr, cols), lambda i, r: (i, r, 0)),
        compiler_params=pltpu.CompilerParams(
            dimension_semantics=("parallel", "parallel"),
            vmem_limit_bytes=_VMEM_LIMIT_BYTES,
        ),
        **extra_kwargs,
    )(x3, scale3)

    if padded_n != n:
        out = out.reshape(b, padded_n)[:, :n]
    return out.reshape(x.shape)


class DropPath:
    """Mirror of the PyTorch DropPath module (no learnable parameters)."""

    def __init__(self, drop_prob: float = 0.0, scale_by_keep: bool = True):
        self.drop_prob = float(drop_prob)
        self.scale_by_keep = bool(scale_by_keep)
        self.training = True

    def __call__(self, x, *, key=None, seed: int = 0):
        # Callers should thread a distinct key (or seed) per layer/step so that
        # masks are independent across DropPath instances (matches PyTorch).
        return drop_path_pallas(
            x,
            drop_prob=self.drop_prob,
            training=self.training,
            scale_by_keep=self.scale_by_keep,
            key=key,
            seed=seed,
        )


if __name__ == "__main__":
    key = jax.random.PRNGKey(0)
    keep_prob = 0.5

    def check(xn, yn):
        for i in range(xn.shape[0]):
            zero_ok = np.allclose(yn[i], 0.0)
            scaled_ok = np.allclose(yn[i], xn[i] / keep_prob, rtol=1e-5, atol=1e-5)
            assert zero_ok or scaled_ok, f"sample {i}: mask not per-sample-constant"

    # --- Case 1: lane-dense divisible layout (n = 4*16*16 = 1024) -----------
    x = jax.random.normal(key, (2, 4, 16, 16), dtype=jnp.float32)
    mod = DropPath(drop_prob=0.5, scale_by_keep=True)
    mod.training = True
    y = jax.block_until_ready(mod(x, seed=42))
    check(np.asarray(x), np.asarray(y))

    # --- Case 2: ragged feature count, no padding (n = 3*7*7 = 147) ---------
    x2 = jax.random.normal(jax.random.PRNGKey(1), (2, 3, 7, 7), dtype=jnp.float32)
    y2 = jax.block_until_ready(mod(x2, seed=7))
    check(np.asarray(x2), np.asarray(y2))

    # --- Eval path: identity --------------------------------------------------
    mod.training = False
    y_eval = jax.block_until_ready(mod(x))
    assert np.allclose(np.asarray(y_eval), np.asarray(x))

    print("KERNEL_OK")
</pallas_src>

<mosaic_0001>
module attributes {stable_mosaic.version = 11 : i64} {
  func.func @_drop_path_kernel(%arg0: i32, %arg1: i32, %arg2: memref<1x1x1024xf32, #tpu.memory_space<vmem>>, %arg3: memref<1x1x1xf32, #tpu.memory_space<vmem>>, %arg4: memref<1x1x1024xf32, #tpu.memory_space<vmem>>) attributes {dimension_semantics = [#tpu.dimension_semantics<parallel>, #tpu.dimension_semantics<parallel>], iteration_bounds = array<i64: 2, 1>, scalar_prefetch = 0 : i64, scratch_operands = 0 : i64, tpu.core_type = #tpu.core_type<tc>, window_params = [{transform_indices = @transform_0, window_bounds = array<i64: 1, 1, 1024>}, {transform_indices = @transform_1, window_bounds = array<i64: 1, 1, 1>}, {transform_indices = @transform_2, window_bounds = array<i64: 1, 1, 1024>}]} {
    %c0 = arith.constant 0 : index
    %c0_0 = arith.constant 0 : index
    %c0_1 = arith.constant 0 : index
    %0 = vector.load %arg2[%c0, %c0_0, %c0_1] : memref<1x1x1024xf32, #tpu.memory_space<vmem>>, vector<1x1x1024xf32>
    %c0_2 = arith.constant 0 : index
    %c0_3 = arith.constant 0 : index
    %c0_4 = arith.constant 0 : index
    %1 = vector.load %arg3[%c0_2, %c0_3, %c0_4] : memref<1x1x1xf32, #tpu.memory_space<vmem>>, vector<1x1x1xf32>
    %2 = vector.broadcast %1 : vector<1x1x1xf32> to vector<1x1x1024xf32>
    %3 = arith.mulf %0, %2 : vector<1x1x1024xf32>
    %c0_5 = arith.constant 0 : index
    %c0_6 = arith.constant 0 : index
    %c0_7 = arith.constant 0 : index
    %4 = vector.load %arg4[%c0_5, %c0_6, %c0_7] : memref<1x1x1024xf32, #tpu.memory_space<vmem>>, vector<1x1x1024xf32>
    tpu.vector_store %arg4[%c0_5, %c0_6, %c0_7], %3 {strides = array<i32>} : memref<1x1x1024xf32, #tpu.memory_space<vmem>>, vector<1x1x1024xf32>,
    return
  }
  func.func @transform_0(%arg0: i32, %arg1: i32) -> (i32, i32, i32) {
    %c0_i32 = arith.constant 0 : i32
    %c0_i32_0 = arith.constant 0 : i32
    return %arg0, %arg1, %c0_i32 : i32, i32, i32
  }
  func.func @transform_1(%arg0: i32, %arg1: i32) -> (i32, i32, i32) {
    %c0_i32 = arith.constant 0 : i32
    %c0_i32_0 = arith.constant 0 : i32
    %c0_i32_1 = arith.constant 0 : i32
    return %arg0, %c0_i32, %c0_i32_0 : i32, i32, i32
  }
  func.func @transform_2(%arg0: i32, %arg1: i32) -> (i32, i32, i32) {
    %c0_i32 = arith.constant 0 : i32
    %c0_i32_0 = arith.constant 0 : i32
    return %arg0, %arg1, %c0_i32 : i32, i32, i32
  }
}

</mosaic_0001>

<bundles_post_ra>
// kernel: tpu_custom_call.1
= control target key start
LH: loop header
LB: loop body
LE: loop exit
PB: predicated region body
PF: predicated region fallthrough
CT: control target
= control target key end

     0   :  { %7 = vsyncpa [#allocation3], 0  ;;  %s705_s0 = inlined_call_operand.hbm [shape: f32[2,1,1024], index: 0, kind: input, shape index: {}]   ;;  %s706_s1 = inlined_call_operand.vmem [shape: f32[2,1,1], index: 1, kind: input, shape index: {}]   ;;  %s707_s2 = inlined_call_operand.hbm [shape: f32[2,1,1024], index: 2, kind: output, shape index: {}]  }
   0x1   :  { %9 = vsyncpa [#allocation3 + $0x1], 0 }
   0x2   :  { %10 = vsyncpa [#allocation4], 0 }
   0x3   :  { %12 = vsyncpa [#allocation4 + $0x1], 0  ;;  %s528_s9 = smov 0   ;;  %s530_s10 = smov 0  }
   0x4   :  { %s532_s11 = smov 0   ;;  %s534_s12 = smov 0  }
   0x5   :  { %s536_s13 = smov 0   ;;  %s538_s14 = smov 0  }
   0x6 LB: > { %s315_s15 = sadd.s32 4294967295, %s508_s14   ;;  %s316_s16 = sadd.s32 4294967294, %s508_s14   ;;  %s508_s14 = sphi %s538_s14, %s18_s14   ;;  %s504_s13 = sphi %s536_s13, %s723_s13   ;;  %s500_s12 = sphi %s534_s12, %s722_s12   ;;  %s496_s11 = sphi %s532_s11, %s721_s11   ;;  %s492_s10 = sphi %s530_s10, %s720_s10   ;;  %s488_s9 = sphi %s528_s9, %s719_s9  }
   0x7   : > { %s30_s17 = sadd.s32 1, %s504_s13  ;;  %s39_s18 = sadd.s32 1, %s496_s11 }
   0x8   : > { %p32_p0 = scmp.ge.s32.totalorder %s30_s17, 2  ;;  %p46_p1 = scmp.ne.s32.totalorder %s496_s11, %s492_s10 }
   0x9   : > { %p47_p2 = scmp.eq.s32.totalorder %s508_s14, 0  ;;  %p52_p3 = scmp.ne.s32.totalorder %s492_s10, %s488_s9 }
   0xa   : > { %s725_s17 = smov (%p32_p0, %s30_s17), 0  ;;  %p53_p5 = scmp.eq.s32.totalorder %s315_s15, 0 }
   0xb   : > { %p569_p4 = por %p47_p2, %p46_p1  ;;  %s34_s20 = ssub.s32 %s504_s13, %s725_s17 }
   0xc   : > { %p104_p6 = scmp.eq.s32.totalorder %s315_s15, 1  ;;  %p37_p7 = scmp.eq.s32.totalorder %s34_s20, 0 }
   0xd   : > { %p575_p8 = por %p53_p5, %p52_p3  ;;  %p110_p10 = scmp.eq.s32.totalorder %s316_s16, 1 }
   0xe   : > { %p579_p9 = por %p104_p6, %p46_p1  ;;  %p344_p13 = scmp.lt.s32.totalorder %s508_s14, 2 }
   0xf   : > { %s584_s23 = scalar_select %p37_p7, %s496_s11, %s39_s18  }
  0x10   : > { %s711_s22 = scalar_select %p579_p9, 1, 0 }
  0x11   : > { %p586_p11 = por %p110_p10, %p52_p3  ;;  %s130_s25 = sand.u32 1, %s496_s11  }
  0x12   : > { %s319_s26 = sshll.u32 %s130_s25, 3  ;;  %s330_s27 = sshll.u32 %s504_s13, 7 }
  0x13   : > { %s712_s24 = scalar_select %p586_p11, 1, 0 }
  0x14   : > { %s597_s30 = scalar_lea.hbm %s705_s0, %s330_s27  ;;  %s134_s3 = scalar_lea.vmem [#allocation2], %s319_s26 }
  0x15   : > { %s144_s4 = sshll.u32 %s134_s3, 4  ;;  %p603_p0 = pnand %p344_p13, %p569_p4  ;;  %s599_s4 = int_to_ptr.vmem [resolvable:$true] %s144_s4 }
  0x16   : > { %s131_s6 = scalar_lea.sflag [#allocation3], %s130_s25  ;;  %s396_s7 = scalar_lea.hbm %s597_s30, 128 }
  0x17   : > { %p397_p3 = scmp.ne.s32.totalorder %s597_s30, %s396_s7  ;;  %p398_p5 = pneg %p603_p0 }
  0x18   : > { %s401_s16 = scalar_lea.hbm %s705_s0, 256  ;;  %p402_p4 = scmp.lt.u32.totalorder %s597_s30, %s705_s0 }
  0x19   : > { %p399_p6 = pnand %p398_p5, %p397_p3  ;;  %p403_p10 = scmp.lt.u32.totalorder %s401_s16, %s396_s7 }
  0x1a   : > { %p405_p12 = scmp.lt.u32.totalorder %s396_s7, %s597_s30 }
  0x1b   : > { %p400_p7 = pneg %p399_p6  ;;  %p404_p13 = por %p403_p10, %p402_p4 }
  0x1d   : > { %p406_p1 = por %p405_p12, %p404_p13 }
  0x1f   : > { %p407_p2 = pnand %p406_p1, %p400_p7 }
  0x21   : > { %410 = shalt.err (!%p407_p2)
}
  0x22   : > { %s411_s20 = scalar_lea.vmem %s599_s4, 128  ;;  %s510_s25 = smov [#allocation2]  }
  0x23   : > { %p412_p3 = scmp.ne.s32.totalorder %s599_s4, %s411_s20  ;;  %s416_s26 = sshll.u32 %s510_s25, 4  ;;  %s417_s26 = int_to_ptr.vmem [resolvable:$false] %s416_s26 }
  0x24   : > { %s418_s27 = scalar_lea.vmem %s417_s26, 256  ;;  %p419_p9 = scmp.lt.s32.totalorder %s599_s4, %s417_s26 }
  0x25   : > { %p414_p6 = pnand %p412_p3, %p398_p5  ;;  %p420_p4 = scmp.lt.s32.totalorder %s418_s27, %s411_s20 }
  0x27   : > { %p415_p11 = pneg %p414_p6  ;;  %p421_p10 = por %p420_p4, %p419_p9 }
  0x29   : > { %p422_p12 = pnand %p421_p10, %p415_p11 }
  0x2b   : > { %425 = shalt.err (!%p422_p12)
}
  0x2c   : > { %339 = dma.hbm_to_vmem [thread:$0]  (!%p603_p0), %s597_s30, 128, %s599_s4, %s131_s6  }
  0x2d   : > { %p714_p1 = scmp.lt.s32.totalorder %s508_s14, 3  ;;  %p715_p2 = scmp.ge.s32.totalorder %s508_s14, 1 }
  0x2f   : > { %p156_p5 = pnand %p715_p2, %p714_p1 }
  0x30   : > { %s639_s28 = sand.u32 (!%p156_p5), 1, %s492_s10  }
  0x31   : > { %159 = sbr.rel (%p156_p5) target bundleno = 209 (0xd1), region = 28  ;;  %s323_s29 = sshll.u32 (!%p156_p5), %s639_s28, 3 }
  0x32   : > { %s162_s3 = scalar_lea.sflag (!%p156_p5), [#allocation3], %s639_s28  ;;  %s165_s7 = scalar_lea.vmem (!%p156_p5), [#allocation2], %s323_s29 }
  0x38   : > { %479 = dma.done.wait (%p575_p8), %s162_s3, 128  }
  0x39   : > { %481 = vsyncadd (%p575_p8), %s162_s3, 4294967168  ;;  %p189_p9 = scmp.lt.s32.totalorder %s500_s12, 1  ;;  %v511_v0 = vmov 0   ;;  %v199_v2 = vlaneseq  ;;  %v192_v6 = vld [vmem:[%s165_s7] sm:$0xff]  ;;  %s331_s21 = sshll.u32 %s500_s12, 7 }
  0x3a   : > { %395 = vset.pattern.permute.xlu0 %v511_v0  ;;  %s188_s8 = scalar_lea.vmem [#allocation5], %s323_s29  ;;  %s656_s19 = scalar_lea.hbm %s707_s2, %s331_s21 }
  0x3b   : > { %s190_s30 = scalar_select %p189_p9, %s500_s12, 1  ;;  %v200_v3 = vshrl.u32 %v199_v2, 7 }
  0x3c   : > { %s222_s15 = sshll.u32 %s188_s8, 4  ;;  %s206_s20 = scalar_lea.sflag [#allocation4], %s639_s28  ;;  %s658_s15 = int_to_ptr.vmem [resolvable:$true] %s222_s15 }
  0x3d   : > { %s191_s6 = scalar_lea.vmem %s706_s1, %s190_s30  ;;  %v201_v4 = vsub.s32 0, %v200_v3  ;;  %s426_s25 = scalar_lea.vmem %s658_s15, 128 }
  0x3e   : > { %v193_v1 = vld [vmem:[%s191_s6] sm:$0x1]  ;;  %p427_p8 = scmp.ne.s32.totalorder %s658_s15, %s426_s25  ;;  %p716_p11 = scmp.ne.s32.totalorder %s711_s22, 0 }
  0x3f   : > { %196 = vperm.xlu0 %395, %v193_v1   ;;  %s512_s12 = smov [#allocation5]  }
  0x40   : > { %p428_p0 = pnand %p427_p8, %p716_p11  ;;  %s430_s26 = sshll.u32 %s512_s12, 4  ;;  %s431_s26 = int_to_ptr.vmem [resolvable:$false] %s430_s26 }
  0x41   : > { %s432_s27 = scalar_lea.vmem %s431_s26, 256  ;;  %p433_p13 = scmp.lt.s32.totalorder %s658_s15, %s431_s26 }
  0x42   : > { %p429_p7 = pneg %p428_p0  ;;  %p434_p3 = scmp.lt.s32.totalorder %s432_s27, %s426_s25 }
  0x44   : > { %p435_p6 = por %p434_p3, %p433_p13 }
  0x46   : > { %p436_p4 = pnand %p435_p6, %p429_p7 }
  0xbe   : > { %v197_v5 = vpop.permute.xlu0 %196 }
  0xbf   : > { %v202_v7 = vrot.slane %v197_v5, %v201_v4 }
  0xc1   : > { %v203_v8 = vmul.f32 %v202_v7, %v192_v6 }
  0xc3   : > { %204 = vst [vmem:[%s188_s8] sm:$0xff] %v203_v8 }
  0xc4   : > { %439 = shalt.err (!%p436_p4)
}
  0xc5   : > { %s440_s28 = scalar_lea.hbm %s656_s19, 128  ;;  %s444_s7 = scalar_lea.hbm %s707_s2, 256 }
  0xc6   : > { %p441_p10 = scmp.ne.s32.totalorder %s656_s19, %s440_s28  ;;  %p445_p2 = scmp.lt.u32.totalorder %s656_s19, %s707_s2 }
  0xc7   : > { %p446_p5 = scmp.lt.u32.totalorder %s444_s7, %s440_s28  ;;  %p448_p8 = scmp.lt.u32.totalorder %s440_s28, %s656_s19 }
  0xc8   : > { %p442_p12 = pnand %p441_p10, %p716_p11 }
  0xc9   : > { %p447_p9 = por %p446_p5, %p445_p2 }
  0xca   : > { %p443_p1 = pneg %p442_p12 }
  0xcb   : > { %p449_p0 = por %p448_p8, %p447_p9 }
  0xcd   : > { %p450_p7 = pnand %p449_p0, %p443_p1 }
  0xcf   : > { %453 = shalt.err (!%p450_p7)
}
  0xd0   : > { %334 = dma.vmem_to_hbm [thread:$0]  (%p716_p11), %s658_s15, 128, %s656_s19, %s206_s20  }
  0xd1 PF: > { %s234_s5 = sand.u32 1, %s488_s9   ;;  %p717_p13 = scmp.ne.s32.totalorder %s712_s24, 0 }
  0xd2   : > { %p718_p3 = scmp.ge.s32.totalorder %s508_s14, 2  ;;  %s235_s6 = scalar_lea.sflag [#allocation4], %s234_s5 }
  0xd4   : > { %p341_p6 = pnand %p718_p3, %p717_p13 }
  0xd6   : > { %483 = dma.done.wait (!%p341_p6), %s235_s6, 128  }
  0xd7   : > { %485 = vsyncadd (!%p341_p6), %s235_s6, 4294967168  ;;  %s18_s14 = sadd.s32 1, %s508_s14   ;;  %s719_s9 = smov %s492_s10 }
  0xd8   : > { %p15_p4 = scmp.ge.s32.totalorder %s18_s14, 4   ;;  %s720_s10 = smov %s496_s11 }
  0xd9   : > { %s721_s11 = smov %s584_s23  ;;  %s722_s12 = smov %s504_s13 }
  0xda   : > { %s723_s13 = smov %s725_s17  ;;  %17 = sbr.rel (!%p15_p4) target bundleno = 6 (0x6), region = 76 }
  0xe1   :  { %240 = vsyncpa [#allocation3], 1 }
  0xe2   :  { %242 = vsyncpa [#allocation3 + $0x1], 1 }
  0xe3   :  { %243 = vsyncpa [#allocation4], 1 }
  0xe4   :  { %245 = vsyncpa [#allocation4 + $0x1], 1 }

</bundles_post_ra>
